<compile_context>
chip_gen: v7x
topology: tpu7x:2x2x1
jax: 0.10.0
libtpu: 0.0.40
codegen_flags: <defaults>
</compile_context>

<pallas_src>
import functools

import jax
import jax.numpy as jnp
from jax import lax
from jax.experimental import pallas as pl
from jax.experimental.pallas import tpu as pltpu


def _round_up(x, m):
    return (x + m - 1) // m * m


# ---------------------------------------------------------------------------
# 1) / 3)  Row-tiled projection kernels: y = x @ W (+ b)
# ---------------------------------------------------------------------------
def _rowtile_matmul_kernel(x_ref, w_ref, o_ref):
    o_ref[...] = jnp.dot(x_ref[...], w_ref[...],
                         preferred_element_type=jnp.float32).astype(o_ref.dtype)


def _rowtile_matmul_bias_kernel(x_ref, w_ref, b_ref, o_ref):
    acc = jnp.dot(x_ref[...], w_ref[...], preferred_element_type=jnp.float32)
    o_ref[...] = (acc + b_ref[...].astype(jnp.float32)).astype(o_ref.dtype)


def _rowtile_matmul(x2d, w, b=None, *, out_dtype=None, row_tile=256):
    """y = x2d @ w (+ b), grid over tiles of `row_tile` rows of x2d.

    Folding all (batch * token) rows into the matmul M dimension keeps the MXU
    fed with large row tiles.  Use row_tile=128 on v5e (4x128x128 MXU).
    """
    M, K = x2d.shape
    Kw, Nout = w.shape
    assert K == Kw
    out_dtype = out_dtype or x2d.dtype

    tm = min(row_tile, _round_up(M, 8))
    M_pad = _round_up(M, tm)
    if M_pad != M:
        x2d = jnp.pad(x2d, ((0, M_pad - M), (0, 0)))

    in_specs = [
        pl.BlockSpec((tm, K), lambda i: (i, 0)),
        # Constant index_map: the weight block is revisited by every grid step.
        # (On v7x with large `dim`, add pipeline_mode=pl.Buffered(1) here to avoid
        #  double-buffering the weights and to save VMEM.)
        pl.BlockSpec((K, Nout), lambda i: (0, 0)),
    ]
    args = [x2d, w]
    if b is not None:
        in_specs.append(pl.BlockSpec((1, Nout), lambda i: (0, 0)))
        args.append(b.reshape(1, Nout))
        kernel = _rowtile_matmul_bias_kernel
    else:
        kernel = _rowtile_matmul_kernel

    y = pl.pallas_call(
        kernel,
        out_shape=jax.ShapeDtypeStruct((M_pad, Nout), out_dtype),
        grid_spec=pltpu.PrefetchScalarGridSpec(
            num_scalar_prefetch=0,
            grid=(M_pad // tm,),
            in_specs=in_specs,
            out_specs=pl.BlockSpec((tm, Nout), lambda i: (i, 0)),
        ),
        compiler_params=pltpu.CompilerParams(
            dimension_semantics=("parallel",)),
    )(*args)
    return y[:M] if M_pad != M else y


# ---------------------------------------------------------------------------
# 2) attention core: softmax(q k^T) v, one batch element per grid step
# ---------------------------------------------------------------------------
def _attn_core_kernel(qkv_ref, o_ref, *, heads, dim_head):
    """qkv_ref: (1, N, 3*inner) VMEM.   o_ref: (1, N, inner) VMEM.

    Heads are handled with STATIC lane slices (no reshape/transpose -> no XLU
    relayouts, no lane-padded (H, N, Dh) tensors) and only one (N, N) score
    block per head is live at a time (no (H, N, N) materialization).
    The 1/sqrt(dim_head) scale is already folded into the q columns of w_qkv.
    """
    inner = heads * dim_head
    for h in range(heads):  # static, fully unrolled: `heads` is a compile-time const
        lo = h * dim_head
        q = qkv_ref[0, :, lo:lo + dim_head]                             # (N, Dh)
        k = qkv_ref[0, :, inner + lo:inner + lo + dim_head]             # (N, Dh)
        v = qkv_ref[0, :, 2 * inner + lo:2 * inner + lo + dim_head]     # (N, Dh)

        # scores: contract over Dh of both operands (NT matmul, no explicit k.T).
        s = lax.dot_general(q, k, (((1,), (1,)), ((), ())),
                            preferred_element_type=jnp.float32)         # (N, N) f32
        m = jnp.max(s, axis=-1, keepdims=True)
        p = jnp.exp(s - m)
        # approx=True -> EUP vrcp slot (otherwise idle), off the VALU critical path.
        attn = p * pl.reciprocal(jnp.sum(p, axis=-1, keepdims=True), approx=True)

        # P.V: cast probabilities to the v dtype (bf16 inputs -> bf16 MXU on
        # v6e/v7x), keep f32 accumulation.
        ph = lax.dot_general(attn.astype(v.dtype), v, (((1,), (0,)), ((), ())),
                             preferred_element_type=jnp.float32)        # (N, Dh)
        o_ref[0, :, lo:lo + dim_head] = ph.astype(o_ref.dtype)
    # TODO(synk): for long sequences (N >~ 1-2k) on v7x (64 MiB VMEM), switch this
    # per-head section to an online-softmax loop over K/V tiles; dim_head=16 also
    # underfills the MXU contraction depth (model-architecture limitation).


def _attention_core(qkv, *, heads, dim_head, out_dtype):
    B, N, three_inner = qkv.shape
    inner = heads * dim_head
    assert three_inner == 3 * inner
    kernel = functools.partial(_attn_core_kernel, heads=heads, dim_head=dim_head)
    return pl.pallas_call(
        kernel,
        out_shape=jax.ShapeDtypeStruct((B, N, inner), out_dtype),
        grid_spec=pltpu.PrefetchScalarGridSpec(
            num_scalar_prefetch=0,
            grid=(B,),
            in_specs=[pl.BlockSpec((1, N, three_inner), lambda b: (b, 0, 0))],
            out_specs=pl.BlockSpec((1, N, inner), lambda b: (b, 0, 0)),
        ),
        compiler_params=pltpu.CompilerParams(
            dimension_semantics=("parallel",)),
    )(qkv)


# ---------------------------------------------------------------------------
# Full forward
# ---------------------------------------------------------------------------
def attention_forward(x, w_qkv, w_out, b_out, *, heads, dim_head, row_tile=256):
    B, N, dim = x.shape
    inner = heads * dim_head
    scale = dim_head ** (-0.5)
    project_out = not (heads == 1 and dim_head == dim)

    # Fold the softmax scale into the q-columns of the qkv weight (zero kernel cost).
    w_qkv_scaled = w_qkv.at[:, :inner].multiply(jnp.asarray(scale, w_qkv.dtype))

    x2d = x.reshape(B * N, dim)
    qkv2d = _rowtile_matmul(x2d, w_qkv_scaled, out_dtype=x.dtype, row_tile=row_tile)
    qkv = qkv2d.reshape(B, N, 3 * inner)

    attn_out = _attention_core(qkv, heads=heads, dim_head=dim_head, out_dtype=x.dtype)

    if not project_out:
        # torch: to_out is nn.Identity() when heads == 1 and dim_head == dim.
        return attn_out

    out2d = _rowtile_matmul(attn_out.reshape(B * N, inner), w_out, b_out,
                            out_dtype=x.dtype, row_tile=row_tile)
    return out2d.reshape(B, N, dim)


def attention_reference(x, w_qkv, w_out, b_out, *, heads, dim_head):
    """Plain-JAX reference mirroring the PyTorch forward (eval mode)."""
    B, N, dim = x.shape
    inner = heads * dim_head
    scale = dim_head ** (-0.5)
    project_out = not (heads == 1 and dim_head == dim)
    qkv = x @ w_qkv
    q, k, v = jnp.split(qkv, 3, axis=-1)

    def to_heads(t):
        return jnp.transpose(t.reshape(B, N, heads, dim_head), (0, 2, 1, 3))

    q, k, v = to_heads(q), to_heads(k), to_heads(v)
    dots = jnp.einsum('bhnd,bhmd->bhnm', q, k) * scale
    attn = jax.nn.softmax(dots, axis=-1)
    out = jnp.einsum('bhnm,bhmd->bhnd', attn, v)
    out = jnp.transpose(out, (0, 2, 1, 3)).reshape(B, N, inner)
    if not project_out:
        return out
    return out @ w_out + b_out


if __name__ == "__main__":
    # Small shapes consistent with the module: dim=32, heads=4, dim_head=16.
    B, N, dim = 2, 8, 32
    heads, dim_head = 4, 16
    inner = heads * dim_head

    key = jax.random.PRNGKey(0)
    kx, kq, ko, kb = jax.random.split(key, 4)
    x = jax.random.normal(kx, (B, N, dim), dtype=jnp.float32)
    w_qkv = jax.random.normal(kq, (dim, 3 * inner), dtype=jnp.float32) * 0.05
    w_out = jax.random.normal(ko, (inner, dim), dtype=jnp.float32) * 0.05
    b_out = jax.random.normal(kb, (dim,), dtype=jnp.float32) * 0.05

    out = attention_forward(x, w_qkv, w_out, b_out, heads=heads, dim_head=dim_head)
    out = jax.block_until_ready(out)

    ref = attention_reference(x, w_qkv, w_out, b_out, heads=heads, dim_head=dim_head)
    # Tolerance slightly relaxed to cover the approximate (EUP) softmax reciprocal;
    # all matmuls are f32-accumulated.
    assert jnp.allclose(out, ref, rtol=1e-2, atol=1e-2), "mismatch vs reference"

    print("KERNEL_OK")
</pallas_src>

<mosaic_0001>
module attributes {stable_mosaic.version = 11 : i64} {
  func.func @_rowtile_matmul_kernel(%arg0: i32, %arg1: memref<16x32xf32, #tpu.memory_space<vmem>>, %arg2: memref<32x192xf32, #tpu.memory_space<vmem>>, %arg3: memref<16x192xf32, #tpu.memory_space<vmem>>) attributes {dimension_semantics = [#tpu.dimension_semantics<parallel>], iteration_bounds = array<i64: 1>, scalar_prefetch = 0 : i64, scratch_operands = 0 : i64, tpu.core_type = #tpu.core_type<tc>, window_params = [{transform_indices = @transform_0, window_bounds = array<i64: 16, 32>}, {pipeline_mode = #tpu.pipeline_mode<synchronous>, transform_indices = @transform_1, window_bounds = array<i64: 32, 192>}, {transform_indices = @transform_2, window_bounds = array<i64: 16, 192>}]} {
    %c0 = arith.constant 0 : index
    %c0_0 = arith.constant 0 : index
    %0 = vector.load %arg1[%c0, %c0_0] : memref<16x32xf32, #tpu.memory_space<vmem>>, vector<16x32xf32>
    %c0_1 = arith.constant 0 : index
    %c0_2 = arith.constant 0 : index
    %1 = vector.load %arg2[%c0_1, %c0_2] : memref<32x192xf32, #tpu.memory_space<vmem>>, vector<32x192xf32>
    %cst = arith.constant dense<0.000000e+00> : vector<16x192xf32>
    %2 = tpu.matmul %0, %1, %cst {dimension_numbers = #tpu.dot_dimension_numbers<[1], [0], [0], [1], [0, 0, 1, 1], [], []>} : vector<16x32xf32>, vector<32x192xf32>, vector<16x192xf32> -> vector<16x192xf32>
    %c0_3 = arith.constant 0 : index
    %c0_4 = arith.constant 0 : index
    %3 = vector.load %arg3[%c0_3, %c0_4] : memref<16x192xf32, #tpu.memory_space<vmem>>, vector<16x192xf32>
    tpu.vector_store %arg3[%c0_3, %c0_4], %2 {strides = array<i32>} : memref<16x192xf32, #tpu.memory_space<vmem>>, vector<16x192xf32>,
    return
  }
  func.func @transform_0(%arg0: i32) -> (i32, i32) {
    %c0_i32 = arith.constant 0 : i32
    %c0_i32_0 = arith.constant 0 : i32
    return %arg0, %c0_i32 : i32, i32
  }
  func.func @transform_1(%arg0: i32) -> (i32, i32) {
    %c0_i32 = arith.constant 0 : i32
    %c0_i32_0 = arith.constant 0 : i32
    %c0_i32_1 = arith.constant 0 : i32
    return %c0_i32, %c0_i32_0 : i32, i32
  }
  func.func @transform_2(%arg0: i32) -> (i32, i32) {
    %c0_i32 = arith.constant 0 : i32
    %c0_i32_0 = arith.constant 0 : i32
    return %arg0, %c0_i32 : i32, i32
  }
}

</mosaic_0001>

<bundles_post_ra>
// kernel: tpu_custom_call.1
= control target key start
LH: loop header
LB: loop body
LE: loop exit
PB: predicated region body
PF: predicated region fallthrough
CT: control target
= control target key end

     0   :  { %7 = vsyncpa [#allocation3], 0  ;;  %s316_s0 = inlined_call_operand.hbm [shape: f32[16,32], index: 0, kind: input, shape index: {}]   ;;  %s317_s1 = inlined_call_operand.hbm [shape: f32[32,192], index: 1, kind: input, shape index: {}]   ;;  %s318_s2 = inlined_call_operand.hbm [shape: f32[16,192], index: 2, kind: output, shape index: {}]  }
   0x1   :  { %8 = vsyncpa [#allocation6], 0 }
   0x2   :  { %9 = vsyncpa [#allocation4], 0  ;;  %s251_s9 = smov [#allocation2]   ;;  %s179_s13 = scalar_lea.hbm %s316_s0, 256 }
   0x3   :  { %s15_s10 = sshll.u32 %s251_s9, 4  ;;  %p180_p0 = scmp.ne.s32.totalorder %s316_s0, %s179_s13  ;;  %s16_s10 = int_to_ptr.vmem [resolvable:$true] %s15_s10 }
   0x4   :  { %p183_p1 = scmp.lt.u32.totalorder %s179_s13, %s316_s0 }
   0x6   :  { %p185_p2 = pnand %p183_p1, %p180_p0 }
   0x8   :  { %188 = shalt.err (!%p185_p2)
}
   0x9   :  { %s189_s18 = scalar_lea.vmem %s16_s10, 256  ;;  %p194_p4 = scmp.lt.s32.totalorder %s16_s10, %s16_s10 }
   0xa   :  { %p190_p3 = scmp.ne.s32.totalorder %s16_s10, %s189_s18  ;;  %p195_p5 = scmp.lt.s32.totalorder %s189_s18, %s189_s18 }
   0xc   :  { %p196_p6 = por %p195_p5, %p194_p4 }
   0xe   :  { %p197_p7 = pnand %p196_p6, %p190_p3 }
  0x10   :  { %200 = shalt.err (!%p197_p7)
}
  0x11   :  { %s252_s19 = smov 128   ;;  %s253_s20 = smov 8  }
  0x12   :  { %21 = dma.hbm_to_vmem [thread:$0]  %s316_s0, 256, %s16_s10, [#allocation3], %s252_s19, %s252_s19, %s253_s20  }
  0x13   :  { %s254_s23 = smov [#allocation5]   ;;  %s201_s27 = scalar_lea.hbm %s317_s1, 1024 }
  0x14   :  { %s27_s24 = sshll.u32 %s254_s23, 4  ;;  %p202_p8 = scmp.ne.s32.totalorder %s317_s1, %s201_s27  ;;  %s28_s24 = int_to_ptr.vmem [resolvable:$true] %s27_s24 }
  0x15   :  { %p205_p9 = scmp.lt.u32.totalorder %s201_s27, %s317_s1 }
  0x17   :  { %p207_p10 = pnand %p205_p9, %p202_p8 }
  0x19   :  { %210 = shalt.err (!%p207_p10)
}
  0x1a   :  { %s211_s4 = scalar_lea.vmem %s28_s24, 1024  ;;  %p216_p12 = scmp.lt.s32.totalorder %s28_s24, %s28_s24 }
  0x1b   :  { %p212_p11 = scmp.ne.s32.totalorder %s28_s24, %s211_s4  ;;  %p217_p13 = scmp.lt.s32.totalorder %s211_s4, %s211_s4 }
  0x1d   :  { %p218_p0 = por %p217_p13, %p216_p12 }
  0x1f   :  { %p219_p1 = pnand %p218_p0, %p212_p11 }
  0x21   :  { %222 = shalt.err (!%p219_p1)
}
  0x22   :  { %s255_s0 = smov 256   ;;  %s256_s5 = smov 16  }
  0x23   :  { %33 = dma.hbm_to_vmem [thread:$0]  %s317_s1, 1024, %s28_s24, [#allocation6], %s255_s0, %s255_s0, %s256_s5  }
  0x24   :  { %245 = dma.done.wait [#allocation3], 256  }
  0x25   :  { %246 = vsyncadd [#allocation3], 4294967040 }
  0x26   :  { %247 = dma.done.wait [#allocation6], 1024  }
  0x27   :  { %248 = vsyncadd [#allocation6], 4294966272  ;;  %v257_v0 = vmov 0.0   ;;  %v43_v1 = vld [vmem:[#allocation5 + $0x8] sm:$0xff]  ;;  %v45_v2 = vld [vmem:[#allocation5 + $0x18] sm:$0xff]  ;;  %vm50_vm0 = vcmask 261120  }
  0x28   :  { %121 = vmatprep.mubr.f32.mxu0 %v257_v0  ;;  %127 = vmatprep.mubr.f32.mxu1 %v257_v0  ;;  %v42_v3 = vld [vmem:[#allocation5] sm:$0xff]  ;;  %v159_v4 = vpack.c.bf16 %v45_v2, %v43_v1  ;;  %v44_v5 = vld [vmem:[#allocation5 + $0x10] sm:$0xff]  ;;  %v47_v6 = vld [vmem:[#allocation5 + $0x28] sm:$0xff]  ;;  %s258_s1 = smov [#allocation7]   ;;  %vm135_vm1 = vcmask 523264  }
  0x29   :  { %v49_v7 = vld [vmem:[#allocation5 + $0x38] sm:$0xff]  ;;  %v161_v8 = vpack.c.bf16 %v44_v5, %v42_v3  ;;  %v46_v10 = vld [vmem:[#allocation5 + $0x20] sm:$0xff]  ;;  %v48_v11 = vld [vmem:[#allocation5 + $0x30] sm:$0xff]  ;;  %s144_s8 = sshll.u32 %s258_s1, 4  ;;  %s145_s8 = int_to_ptr.vmem [resolvable:$true] %s144_s8 }
  0x2a   :  { %v163_v9 = vpack.c.bf16 %v49_v7, %v47_v6  ;;  %160 = vmatprep.subr.bf16.mxu0 %v159_v4  ;;  %167 = vmatprep.subr.bf16.mxu1 %v159_v4  ;;  %v165_v12 = vpack.c.bf16 %v48_v11, %v46_v10  ;;  %v40_v13 = vld [vmem:[#allocation2] sm:$0xff]  ;;  %v41_v14 = vld [vmem:[#allocation2 + $0x8] sm:$0xff]  ;;  %s223_s9 = scalar_lea.vmem %s145_s8, 512  ;;  %p228_p3 = scmp.lt.s32.totalorder %s145_s8, %s145_s8 }
  0x2b   :  { %162 = vmatpush1.bf16.msra.mxu0 %v161_v8  ;;  %169 = vmatpush1.bf16.msra.mxu1 %v161_v8  ;;  %p224_p2 = scmp.ne.s32.totalorder %s145_s8, %s223_s9  ;;  %p229_p4 = scmp.lt.s32.totalorder %s223_s9, %s223_s9 }
  0x2c   :  { %164 = vmatprep.subr.bf16.mxu0 %v163_v9  ;;  %168 = vmatprep.subr.bf16.mxu1 %v163_v9 }
  0x2d   :  { %p230_p5 = por %p229_p4, %p228_p3 }
  0x2f   :  { %166 = vmatpush1.bf16.msra.mxu0 %v165_v12  ;;  %170 = vmatpush1.bf16.msra.mxu1 %v165_v12  ;;  %p231_p6 = pnand %p230_p5, %p224_p2 }
  0x32   :  { %157 = vmatmul.mubr.msk.f32.vlgmr.msra.gmra.mrb[0].mxu0 %vm50_vm0, %v40_v13  ;;  %158 = vmatmul.mubr.msk.f32.vlgmr.msra.gmra.mrb[0].mxu1 %vm50_vm0, %v41_v14 }
 0x105   :  { %v123_v15 = vpop.f32.mrb[0].mxu0  ;;  %v129_v16 = vpop.f32.mrb[0].mxu1 }
 0x106   :  { %134 = vst [vmem:[#allocation7] sm:$0xff] %v123_v15  ;;  %137 = vst [vmem:[#allocation7 + $0x10] sm:$0xff] %v129_v16  ;;  %v125_v17 = vpop.f32.mrb[1].mxu0  ;;  %v131_v18 = vpop.f32.mrb[1].mxu1 }
 0x107   :  { %136 = vst.msk [vmem:[#allocation7 + $0x8] sm:$0xff] %vm135_vm1, %v125_v17  ;;  %138 = vst.msk [vmem:[#allocation7 + $0x18] sm:$0xff] %vm135_vm1, %v131_v18 }
 0x108   :  { %234 = shalt.err (!%p231_p6)
}
 0x109   :  { %s235_s12 = scalar_lea.hbm %s318_s2, 512 }
 0x10a   :  { %p236_p7 = scmp.ne.s32.totalorder %s318_s2, %s235_s12  ;;  %p239_p8 = scmp.lt.u32.totalorder %s235_s12, %s318_s2 }
 0x10c   :  { %p241_p9 = pnand %p239_p8, %p236_p7 }
 0x10e   :  { %244 = shalt.err (!%p241_p9)
}
 0x10f   :  { %150 = dma.vmem_to_hbm [thread:$0]  %s145_s8, 512, %s318_s2, [#allocation4], %s255_s0, %s255_s0, %s256_s5  }
 0x110   :  { %249 = dma.done.wait [#allocation4], 512  }
 0x111   :  { %250 = vsyncadd [#allocation4], 4294966784 }
 0x112   :  { %154 = vsyncpa [#allocation3], 1 }
 0x113   :  { %155 = vsyncpa [#allocation6], 1 }
 0x114   :  { %156 = vsyncpa [#allocation4], 1 }

</bundles_post_ra>
